<compile_context>
chip_gen: v7x
topology: tpu7x:2x2x1
jax: 0.10.0
libtpu: 0.0.40
codegen_flags: <defaults>
</compile_context>

<pallas_src>
import jax
import jax.numpy as jnp
import numpy as np
from jax.experimental import pallas as pl
from jax.experimental.pallas import tpu as pltpu

# Model hyperparameters (from kaggler_wavenet.__init__)
N_FILTERS = 3                                       # out_channels of each causal conv
CONV_SPECS = ((3, 1), (7, 3), (14, 7), (28, 14))    # (kernel_size, dilation)
N_BRANCHES = len(CONV_SPECS)
N_CONCAT = N_BRANCHES * N_FILTERS                   # 12 concat channels
N_HIDDEN = 112
N_OUTPUTS = 28
HID_PAD = 128                                       # lane-dense hidden width
OUT_PAD = 128                                       # lane-dense output width


def _ceil_to(n, m):
    return -(-n // m) * m


def _build_conv_matrix(params, n_dyn_fea, seq_len):
    """Host-side block-Toeplitz fold of all 4 causal dilated conv branches.

    Returns Wc (C*L, 12*L) and bias row bc (12*L,) such that, for x_flat of
    shape (B, C*L) (row-major (channel, time) flatten of the NCW input),
    relu(x_flat @ Wc + bc) equals torch.Flatten(torch.cat(relu(h0..h3), 1)).
    Causal zero padding is handled by omitting taps that reach before t=0,
    so no padded input tensor is needed at all.
    """
    C, L = n_dyn_fea, seq_len
    Wc = np.zeros((C * L, N_CONCAT * L), np.float32)
    bc = np.zeros((N_CONCAT * L,), np.float32)
    for i, (K, d) in enumerate(CONV_SPECS):
        w = np.asarray(params[f"conv_w{i}"], np.float32)   # (F, C, K)
        b = np.asarray(params[f"conv_b{i}"], np.float32)   # (F,)
        for f in range(N_FILTERS):
            ct = i * N_FILTERS + f
            bc[ct * L:(ct + 1) * L] = b[f]
            for k in range(K):
                off = d * (K - 1 - k)
                if off >= L:
                    continue                                # tap only ever sees causal zeros
                s = np.arange(0, L - off)                   # source time index
                t = s + off                                 # output time index
                for c in range(C):
                    Wc[c * L + s, ct * L + t] += w[f, c, k]
    return Wc, bc


def _kernel(x_ref, wc_ref, bc_ref, w0_ref, b0_ref, w1t_ref, b1_ref, out_ref):
    # Conv branches + ReLU + concat + flatten: one lane-dense MXU matmul.
    h = jnp.dot(x_ref[...], wc_ref[...], preferred_element_type=jnp.float32) + bc_ref[...]
    h = jnp.maximum(h, 0.0)                                                    # (tb, 12L_pad)
    # dense_concat0 -> dropout (identity) -> dense_concat1, all lane-dense.
    # TODO(synk): Dropout(0.2) is applied as inference-mode identity (no RNG mask).
    z0 = jnp.dot(h, w0_ref[...], preferred_element_type=jnp.float32) + b0_ref[...]   # (tb, 128)
    out = jnp.dot(z0, w1t_ref[...], preferred_element_type=jnp.float32) + b1_ref[...]  # (tb, 128)
    out_ref[...] = out.astype(out_ref.dtype)


def kaggler_wavenet_forward(seq_in, params):
    """seq_in: (B, n_dyn_fea, L) float32 (PyTorch NCW). Returns (B, 28) float32."""
    B, C, L = seq_in.shape
    CL = C * L
    L12 = N_CONCAT * L
    clp = _ceil_to(CL, 128)                    # lane-dense flattened input width
    l12p = _ceil_to(L12, 128)                  # lane-dense concat/flatten width

    # Batch tiling: always >= 2 grid steps so "parallel" sharding feeds both
    # TensorCores on dual-core parts; 256-row cap for large batches.
    tb = min(256, _ceil_to(max(1, -(-B // 2)), 8))
    nb = max(2, -(-B // tb))
    bp = nb * tb

    # Flattened, zero-padded input in torch (channel, time) flatten order.
    x = seq_in.reshape(B, CL).astype(jnp.float32)
    x = jnp.pad(x, ((0, bp - B), (0, clp - CL)))

    # Host-built block-Toeplitz conv matrix + bias row (dead taps already pruned).
    wc_np, bc_np = _build_conv_matrix(params, C, L)
    wc = jnp.asarray(np.pad(wc_np, ((0, clp - CL), (0, l12p - L12))))           # (clp, l12p)
    bc = jnp.asarray(np.pad(bc_np, (0, l12p - L12))).reshape(1, l12p)

    # dense_concat0 weight (112, 12L) -> (l12p, 128); row j = ct*L + t matches the
    # flatten order above. Hidden/output dims zero-padded to 128 lanes.
    w0 = jnp.pad(params["dense0_w"].T.astype(jnp.float32),
                 ((0, l12p - L12), (0, HID_PAD - N_HIDDEN)))                    # (l12p, 128)
    b0 = jnp.pad(params["dense0_b"].astype(jnp.float32),
                 (0, HID_PAD - N_HIDDEN)).reshape(1, HID_PAD)
    w1t = jnp.pad(params["dense1_w"].T.astype(jnp.float32),
                  ((0, HID_PAD - N_HIDDEN), (0, OUT_PAD - N_OUTPUTS)))          # (128, 128)
    b1 = jnp.pad(params["dense1_b"].astype(jnp.float32),
                 (0, OUT_PAD - N_OUTPUTS)).reshape(1, OUT_PAD)

    # VMEM budget on padded footprints (double-buffered blocks + resident weights
    # + in-kernel intermediates), capped at 80% of the device's physical VMEM.
    need = (2 * tb * clp * 4                     # x blocks
            + 2 * tb * OUT_PAD * 4               # out blocks
            + 2 * clp * l12p * 4                 # Wc
            + 2 * l12p * HID_PAD * 4             # w0
            + 2 * HID_PAD * OUT_PAD * 4          # w1t
            + 2 * 8 * (l12p + HID_PAD + OUT_PAD) * 4   # bias rows (sublane-padded)
            + tb * (l12p + HID_PAD + OUT_PAD) * 4)     # h / z0 / out temporaries
    try:
        vmem_cap = int(getattr(pltpu.get_tpu_info(), "vmem_capacity_bytes", 64 << 20))
    except Exception:
        vmem_cap = 64 << 20
    vmem_limit = int(min(max(2 * need, 8 << 20), int(vmem_cap * 0.8)))

    out = pl.pallas_call(
        _kernel,
        out_shape=jax.ShapeDtypeStruct((bp, OUT_PAD), jnp.float32),
        grid_spec=pltpu.PrefetchScalarGridSpec(
            num_scalar_prefetch=0,
            grid=(nb,),
            in_specs=[
                pl.BlockSpec((tb, clp), lambda i: (i, 0)),           # x (tiled on batch)
                pl.BlockSpec((clp, l12p), lambda i: (0, 0)),         # Wc (resident)
                pl.BlockSpec((1, l12p), lambda i: (0, 0)),           # bc
                pl.BlockSpec((l12p, HID_PAD), lambda i: (0, 0)),     # w0 (resident)
                pl.BlockSpec((1, HID_PAD), lambda i: (0, 0)),        # b0
                pl.BlockSpec((HID_PAD, OUT_PAD), lambda i: (0, 0)),  # w1t (resident)
                pl.BlockSpec((1, OUT_PAD), lambda i: (0, 0)),        # b1
            ],
            out_specs=pl.BlockSpec((tb, OUT_PAD), lambda i: (i, 0)),
        ),
        compiler_params=pltpu.CompilerParams(
            dimension_semantics=("parallel",),
            vmem_limit_bytes=vmem_limit,
        ),
    )(x, wc, bc, w0, b0, w1t, b1)
    return out[:B, :N_OUTPUTS]


def init_params(key, n_dyn_fea, seq_len):
    """Deterministic synthetic parameters matching the nn.Module shapes."""
    params = {}
    keys = jax.random.split(key, 12)
    ki = 0
    for i, (K, d) in enumerate(CONV_SPECS):
        params[f"conv_w{i}"] = 0.1 * jax.random.normal(
            keys[ki], (N_FILTERS, n_dyn_fea, K), jnp.float32); ki += 1
        params[f"conv_b{i}"] = 0.1 * jax.random.normal(
            keys[ki], (N_FILTERS,), jnp.float32); ki += 1
    in0 = N_FILTERS * 4 * seq_len
    params["dense0_w"] = 0.05 * jax.random.normal(keys[ki], (N_HIDDEN, in0), jnp.float32); ki += 1
    params["dense0_b"] = 0.05 * jax.random.normal(keys[ki], (N_HIDDEN,), jnp.float32); ki += 1
    params["dense1_w"] = 0.05 * jax.random.normal(keys[ki], (N_OUTPUTS, N_HIDDEN), jnp.float32); ki += 1
    params["dense1_b"] = 0.05 * jax.random.normal(keys[ki], (N_OUTPUTS,), jnp.float32); ki += 1
    return params


def reference_forward(seq_in, params):
    """Pure-JAX (XLA) reference mirroring the PyTorch forward."""
    B = seq_in.shape[0]
    hs = []
    for i, (K, d) in enumerate(CONV_SPECS):
        xp = jnp.pad(seq_in, ((0, 0), (0, 0), (d * (K - 1), 0)))
        y = jax.lax.conv_general_dilated(
            xp, params[f"conv_w{i}"], window_strides=(1,), padding="VALID",
            rhs_dilation=(d,), dimension_numbers=("NCH", "OIH", "NCH"))
        hs.append(jax.nn.relu(y + params[f"conv_b{i}"][None, :, None]))
    c_ = jnp.concatenate(hs, axis=1)                 # (B, 12, L)
    flat = c_.reshape(B, -1)                         # torch.Flatten order
    z = flat @ params["dense0_w"].T + params["dense0_b"]
    return z @ params["dense1_w"].T + params["dense1_b"]


if __name__ == "__main__":
    B, C, L = 2, 4, 16        # batch, n_dyn_fea, args.use_days
    key = jax.random.PRNGKey(0)
    k_x, k_p = jax.random.split(key)
    seq_in = jax.random.normal(k_x, (B, C, L), jnp.float32)
    params = init_params(k_p, C, L)

    out = jax.block_until_ready(kaggler_wavenet_forward(seq_in, params))
    assert out.shape == (B, N_OUTPUTS) and out.dtype == jnp.float32

    ref = jax.block_until_ready(reference_forward(seq_in, params))
    np.testing.assert_allclose(np.asarray(out), np.asarray(ref), rtol=1e-3, atol=1e-3)
    print("KERNEL_OK")
</pallas_src>

<mosaic_0001>
module attributes {stable_mosaic.version = 11 : i64} {
  func.func @_kernel(%arg0: i32, %arg1: memref<8x128xf32, #tpu.memory_space<vmem>>, %arg2: memref<128x256xf32, #tpu.memory_space<vmem>>, %arg3: memref<1x256xf32, #tpu.memory_space<vmem>>, %arg4: memref<256x128xf32, #tpu.memory_space<vmem>>, %arg5: memref<1x128xf32, #tpu.memory_space<vmem>>, %arg6: memref<128x128xf32, #tpu.memory_space<vmem>>, %arg7: memref<1x128xf32, #tpu.memory_space<vmem>>, %arg8: memref<8x128xf32, #tpu.memory_space<vmem>>) attributes {dimension_semantics = [#tpu.dimension_semantics<parallel>], iteration_bounds = array<i64: 2>, scalar_prefetch = 0 : i64, scratch_operands = 0 : i64, tpu.core_type = #tpu.core_type<tc>, window_params = [{transform_indices = @transform_0, window_bounds = array<i64: 8, 128>}, {pipeline_mode = #tpu.pipeline_mode<synchronous>, transform_indices = @transform_1, window_bounds = array<i64: 128, 256>}, {pipeline_mode = #tpu.pipeline_mode<synchronous>, transform_indices = @transform_2, window_bounds = array<i64: 1, 256>}, {pipeline_mode = #tpu.pipeline_mode<synchronous>, transform_indices = @transform_3, window_bounds = array<i64: 256, 128>}, {pipeline_mode = #tpu.pipeline_mode<synchronous>, transform_indices = @transform_4, window_bounds = array<i64: 1, 128>}, {pipeline_mode = #tpu.pipeline_mode<synchronous>, transform_indices = @transform_5, window_bounds = array<i64: 128, 128>}, {pipeline_mode = #tpu.pipeline_mode<synchronous>, transform_indices = @transform_6, window_bounds = array<i64: 1, 128>}, {transform_indices = @transform_7, window_bounds = array<i64: 8, 128>}]} {
    %c0 = arith.constant 0 : index
    %c0_0 = arith.constant 0 : index
    %0 = vector.load %arg1[%c0, %c0_0] : memref<8x128xf32, #tpu.memory_space<vmem>>, vector<8x128xf32>
    %c0_1 = arith.constant 0 : index
    %c0_2 = arith.constant 0 : index
    %1 = vector.load %arg2[%c0_1, %c0_2] : memref<128x256xf32, #tpu.memory_space<vmem>>, vector<128x256xf32>
    %cst = arith.constant dense<0.000000e+00> : vector<8x256xf32>
    %2 = tpu.matmul %0, %1, %cst {dimension_numbers = #tpu.dot_dimension_numbers<[1], [0], [0], [1], [0, 0, 1, 1], [], []>} : vector<8x128xf32>, vector<128x256xf32>, vector<8x256xf32> -> vector<8x256xf32>
    %c0_3 = arith.constant 0 : index
    %c0_4 = arith.constant 0 : index
    %3 = vector.load %arg3[%c0_3, %c0_4] : memref<1x256xf32, #tpu.memory_space<vmem>>, vector<1x256xf32>
    %4 = vector.broadcast %3 : vector<1x256xf32> to vector<8x256xf32>
    %5 = arith.addf %2, %4 : vector<8x256xf32>
    %cst_5 = arith.constant 0.000000e+00 : f32
    %6 = vector.broadcast %cst_5 : f32 to vector<8x256xf32>
    %7 = arith.maximumf %5, %6 : vector<8x256xf32>
    %c0_6 = arith.constant 0 : index
    %c0_7 = arith.constant 0 : index
    %8 = vector.load %arg4[%c0_6, %c0_7] : memref<256x128xf32, #tpu.memory_space<vmem>>, vector<256x128xf32>
    %cst_8 = arith.constant dense<0.000000e+00> : vector<8x128xf32>
    %9 = tpu.matmul %7, %8, %cst_8 {dimension_numbers = #tpu.dot_dimension_numbers<[1], [0], [0], [1], [0, 0, 1, 1], [], []>} : vector<8x256xf32>, vector<256x128xf32>, vector<8x128xf32> -> vector<8x128xf32>
    %c0_9 = arith.constant 0 : index
    %c0_10 = arith.constant 0 : index
    %10 = vector.load %arg5[%c0_9, %c0_10] : memref<1x128xf32, #tpu.memory_space<vmem>>, vector<1x128xf32>
    %11 = vector.broadcast %10 : vector<1x128xf32> to vector<8x128xf32>
    %12 = arith.addf %9, %11 : vector<8x128xf32>
    %c0_11 = arith.constant 0 : index
    %c0_12 = arith.constant 0 : index
    %13 = vector.load %arg6[%c0_11, %c0_12] : memref<128x128xf32, #tpu.memory_space<vmem>>, vector<128x128xf32>
    %cst_13 = arith.constant dense<0.000000e+00> : vector<8x128xf32>
    %14 = tpu.matmul %12, %13, %cst_13 {dimension_numbers = #tpu.dot_dimension_numbers<[1], [0], [0], [1], [0, 0, 1, 1], [], []>} : vector<8x128xf32>, vector<128x128xf32>, vector<8x128xf32> -> vector<8x128xf32>
    %c0_14 = arith.constant 0 : index
    %c0_15 = arith.constant 0 : index
    %15 = vector.load %arg7[%c0_14, %c0_15] : memref<1x128xf32, #tpu.memory_space<vmem>>, vector<1x128xf32>
    %16 = vector.broadcast %15 : vector<1x128xf32> to vector<8x128xf32>
    %17 = arith.addf %14, %16 : vector<8x128xf32>
    %c0_16 = arith.constant 0 : index
    %c0_17 = arith.constant 0 : index
    %18 = vector.load %arg8[%c0_16, %c0_17] : memref<8x128xf32, #tpu.memory_space<vmem>>, vector<8x128xf32>
    tpu.vector_store %arg8[%c0_16, %c0_17], %17 {strides = array<i32>} : memref<8x128xf32, #tpu.memory_space<vmem>>, vector<8x128xf32>,
    return
  }
  func.func @transform_0(%arg0: i32) -> (i32, i32) {
    %c0_i32 = arith.constant 0 : i32
    %c0_i32_0 = arith.constant 0 : i32
    return %arg0, %c0_i32 : i32, i32
  }
  func.func @transform_1(%arg0: i32) -> (i32, i32) {
    %c0_i32 = arith.constant 0 : i32
    %c0_i32_0 = arith.constant 0 : i32
    %c0_i32_1 = arith.constant 0 : i32
    return %c0_i32, %c0_i32_0 : i32, i32
  }
  func.func @transform_2(%arg0: i32) -> (i32, i32) {
    %c0_i32 = arith.constant 0 : i32
    %c0_i32_0 = arith.constant 0 : i32
    %c0_i32_1 = arith.constant 0 : i32
    return %c0_i32, %c0_i32_0 : i32, i32
  }
  func.func @transform_3(%arg0: i32) -> (i32, i32) {
    %c0_i32 = arith.constant 0 : i32
    %c0_i32_0 = arith.constant 0 : i32
    %c0_i32_1 = arith.constant 0 : i32
    return %c0_i32, %c0_i32_0 : i32, i32
  }
  func.func @transform_4(%arg0: i32) -> (i32, i32) {
    %c0_i32 = arith.constant 0 : i32
    %c0_i32_0 = arith.constant 0 : i32
    %c0_i32_1 = arith.constant 0 : i32
    return %c0_i32, %c0_i32_0 : i32, i32
  }
  func.func @transform_5(%arg0: i32) -> (i32, i32) {
    %c0_i32 = arith.constant 0 : i32
    %c0_i32_0 = arith.constant 0 : i32
    %c0_i32_1 = arith.constant 0 : i32
    return %c0_i32, %c0_i32_0 : i32, i32
  }
  func.func @transform_6(%arg0: i32) -> (i32, i32) {
    %c0_i32 = arith.constant 0 : i32
    %c0_i32_0 = arith.constant 0 : i32
    %c0_i32_1 = arith.constant 0 : i32
    return %c0_i32, %c0_i32_0 : i32, i32
  }
  func.func @transform_7(%arg0: i32) -> (i32, i32) {
    %c0_i32 = arith.constant 0 : i32
    %c0_i32_0 = arith.constant 0 : i32
    return %arg0, %c0_i32 : i32, i32
  }
}

</mosaic_0001>

<bundles_post_ra>
// kernel: tpu_custom_call.1
= control target key start
LH: loop header
LB: loop body
LE: loop exit
PB: predicated region body
PF: predicated region fallthrough
CT: control target
= control target key end

     0   :  { %s1562_s0 = inlined_call_operand.hbm [shape: f32[16,128], index: 0, kind: input, shape index: {}]   ;;  %s1563_s1 = inlined_call_operand.hbm [shape: f32[128,256], index: 1, kind: input, shape index: {}]   ;;  %s1564_s2 = inlined_call_operand.vmem [shape: f32[1,256], index: 2, kind: input, shape index: {}]   ;;  %s1565_s3 = inlined_call_operand.hbm [shape: f32[256,128], index: 3, kind: input, shape index: {}]   ;;  %s1566_s4 = inlined_call_operand.vmem [shape: f32[1,128], index: 4, kind: input, shape index: {}]   ;;  %s1567_s5 = inlined_call_operand.hbm [shape: f32[128,128], index: 5, kind: input, shape index: {}]   ;;  %s1568_s6 = inlined_call_operand.vmem [shape: f32[1,128], index: 6, kind: input, shape index: {}]   ;;  %s1569_s7 = inlined_call_operand.hbm [shape: f32[16,128], index: 7, kind: output, shape index: {}]  }
   0x1   :  { %1574 = sst [smem:[#allocation16_spill]] %s1563_s1 }
   0x2   :  { %12 = vsyncpa [#allocation3], 0 }
   0x3   :  { %14 = vsyncpa [#allocation3 + $0x1], 0 }
   0x4   :  { %15 = vsyncpa [#allocation6], 0 }
   0x5   :  { %16 = vsyncpa [#allocation9], 0 }
   0x6   :  { %17 = vsyncpa [#allocation4], 0 }
   0x7   :  { %19 = vsyncpa [#allocation4 + $0x1], 0  ;;  %s1293_s24 = smov 0   ;;  %s1295_s25 = smov 0  }
   0x8   :  { %s1297_s26 = smov 0   ;;  %s1299_s27 = smov 0  }
   0x9 LB: > { %s1314_s28 = sadd.s32 4294967295, %s1239_s27   ;;  %s772_s29 = sadd.s32 4294967294, %s1239_s27   ;;  %s1239_s27 = sphi %s1299_s27, %s1597_s27   ;;  %s1235_s26 = sphi %s1297_s26, %s1596_s26   ;;  %s1231_s25 = sphi %s1295_s25, %s1595_s25   ;;  %s1227_s24 = sphi %s1293_s24, %s1594_s24  }
   0xa   : > { %p45_p0 = scmp.ne.s32.totalorder %s1231_s25, %s1227_s24  ;;  %p1570_p1 = scmp.eq.s32.totalorder %s1314_s28, 0 }
   0xb   : > { %p201_p3 = scmp.eq.s32.totalorder %s772_s29, 1  ;;  %p773_p5 = scmp.ge.s32.totalorder %s1239_s27, 1 }
   0xc   : > { %p1323_p4 = por %p1570_p1, %p45_p0  ;;  %p208_p7 = scmp.lt.s32.totalorder %s1239_s27, 3 }
   0xd   : > { %p1328_p6 = por %p201_p3, %p45_p0  ;;  %s1241_s10 = smov [#allocation5]  }
   0xe   : > { %s1575_s30 = scalar_select %p1323_p4, 1, 0 }
   0xf   : > { %s1576_s8 = scalar_select %p1328_p6, 1, 0 }
  0x10   : > { %p1333_p8 = pnand %p773_p5, %p208_p7  ;;  %s220_s11 = sshll.u32 %s1241_s10, 4  ;;  %s1337_s11 = int_to_ptr.vmem [resolvable:$true] %s220_s11 }
  0x11   : > { %1577 = sst [smem:[#allocation15_spill]] %s1576_s8  ;;  %s1242_s13 = smov [#allocation7]  }
  0x12   : > { %s1578_s9 = scalar_select %p1333_p8, 1, 0 }
  0x13   : > { %p983_p9 = pneg %p1333_p8  ;;  %s236_s14 = sshll.u32 %s1242_s13, 4  ;;  %s1348_s14 = int_to_ptr.vmem [resolvable:$true] %s236_s14 }
  0x14   : > { %s1580_s1 = sld [smem:[#allocation16_spill]] }
  0x15   : > { %p1344_p11 = pnand %p983_p9, %p1570_p1 }
  0x17   : > { %p1358_p13 = pneg %p1344_p11 }
  0x1a   : > { %s1051_s17 = scalar_lea.hbm %s1580_s1, 4096 }
  0x1b   : > { %p1052_p12 = scmp.ne.s32.totalorder %s1580_s1, %s1051_s17  ;;  %p1058_p5 = scmp.lt.u32.totalorder %s1051_s17, %s1580_s1 }
  0x1d   : > { %p1054_p0 = pnand %p1358_p13, %p1052_p12 }
  0x1f   : > { %p1055_p3 = pneg %p1054_p0 }
  0x21   : > { %p1060_p7 = pnand %p1058_p5, %p1055_p3 }
  0x23   : > { %1063 = shalt.err (!%p1060_p7)
}
  0x24   : > { %s1064_s23 = scalar_lea.vmem %s1337_s11, 4096  ;;  %p1072_p2 = scmp.lt.s32.totalorder %s1337_s11, %s1337_s11 }
  0x25   : > { %p1065_p9 = scmp.ne.s32.totalorder %s1337_s11, %s1064_s23  ;;  %p1073_p6 = scmp.lt.s32.totalorder %s1064_s23, %s1064_s23 }
  0x27   : > { %p1067_p10 = pnand %p1065_p9, %p1358_p13  ;;  %p1074_p12 = por %p1073_p6, %p1072_p2 }
  0x29   : > { %p1068_p1 = pneg %p1067_p10 }
  0x2b   : > { %p1075_p0 = pnand %p1074_p12, %p1068_p1 }
  0x2d   : > { %1078 = shalt.err (!%p1075_p0)
}
  0x2e   : > { %s1243_s29 = smov 256   ;;  %s1244_s10 = smov 16  }
  0x2f   : > { %986 = dma.hbm_to_vmem [thread:$0]  (!%p1344_p11), %s1580_s1, 4096, %s1337_s11, [#allocation6], %s1243_s29, %s1243_s29, %s1244_s10  }
  0x30   : > { %s1079_s18 = scalar_lea.hbm %s1565_s3, 4096 }
  0x31   : > { %p1080_p2 = scmp.ne.s32.totalorder %s1565_s3, %s1079_s18  ;;  %p1086_p10 = scmp.lt.u32.totalorder %s1079_s18, %s1565_s3 }
  0x33   : > { %p1082_p1 = pnand %p1080_p2, %p1358_p13 }
  0x35   : > { %p1083_p6 = pneg %p1082_p1 }
  0x37   : > { %p1088_p3 = pnand %p1086_p10, %p1083_p6 }
  0x39   : > { %1091 = shalt.err (!%p1088_p3)
}
  0x3a   : > { %s1092_s11 = scalar_lea.vmem %s1348_s14, 4096  ;;  %p1100_p12 = scmp.lt.s32.totalorder %s1348_s14, %s1348_s14 }
  0x3b   : > { %p1093_p5 = scmp.ne.s32.totalorder %s1348_s14, %s1092_s11  ;;  %p1101_p0 = scmp.lt.s32.totalorder %s1092_s11, %s1092_s11 }
  0x3d   : > { %p1095_p7 = pnand %p1093_p5, %p1358_p13  ;;  %p1102_p2 = por %p1101_p0, %p1100_p12 }
  0x3f   : > { %p1096_p9 = pneg %p1095_p7 }
  0x41   : > { %p1103_p1 = pnand %p1102_p2, %p1096_p9 }
  0x43   : > { %1106 = shalt.err (!%p1103_p1)
}
  0x44   : > { %s1245_s29 = smov 128   ;;  %s1246_s10 = smov 8  }
  0x45   : > { %989 = dma.hbm_to_vmem [thread:$0]  (!%p1344_p11), %s1565_s3, 4096, %s1348_s14, [#allocation6], %s1245_s29, %s1245_s29, %s1246_s10  }
  0x46   : > { %s1247_s16 = smov [#allocation8]   ;;  %s1403_s18 = sadd.s32 1, %s1239_s27  }
  0x47   : > { %s252_s17 = sshll.u32 %s1247_s16, 4  ;;  %s1107_s22 = scalar_lea.hbm %s1567_s5, 2048  ;;  %s253_s17 = int_to_ptr.vmem [resolvable:$true] %s252_s17 }
  0x48   : > { %p1108_p6 = scmp.ne.s32.totalorder %s1567_s5, %s1107_s22  ;;  %p1114_p5 = scmp.lt.u32.totalorder %s1107_s22, %s1567_s5 }
  0x4a   : > { %p1110_p10 = pnand %p1108_p6, %p1358_p13 }
  0x4c   : > { %p1111_p3 = pneg %p1110_p10 }
  0x4e   : > { %p1116_p7 = pnand %p1114_p5, %p1111_p3 }
  0x50   : > { %1119 = shalt.err (!%p1116_p7)
}
  0x51   : > { %s1120_s14 = scalar_lea.vmem %s253_s17, 2048  ;;  %p1128_p2 = scmp.lt.s32.totalorder %s253_s17, %s253_s17 }
  0x52   : > { %p1121_p9 = scmp.ne.s32.totalorder %s253_s17, %s1120_s14  ;;  %p1129_p1 = scmp.lt.s32.totalorder %s1120_s14, %s1120_s14 }
  0x54   : > { %p1123_p12 = pnand %p1121_p9, %p1358_p13  ;;  %p1130_p4 = por %p1129_p1, %p1128_p2 }
  0x56   : > { %p1124_p0 = pneg %p1123_p12 }
  0x58   : > { %p1131_p8 = pnand %p1130_p4, %p1124_p0 }
  0x5a   : > { %1134 = shalt.err (!%p1131_p8)
}
  0x5b   : > { %992 = dma.hbm_to_vmem [thread:$0]  (!%p1344_p11), %s1567_s5, 2048, %s253_s17, [#allocation9], %s1245_s29, %s1245_s29, %s1246_s10  }
  0x5c   : > { %s29_s1 = ssub.s32 %s1239_s27, %s1403_s18  ;;  %s32_s8 = sadd.s32 1, %s1235_s26 }
  0x5d   : > { %p30_p4 = scmp.eq.s32.totalorder %s29_s1, 0  ;;  %p39_p8 = scmp.ne.s32.totalorder %s1235_s26, %s1231_s25 }
  0x5e   : > { %p40_p13 = scmp.eq.s32.totalorder %s1239_s27, 0  ;;  %p1004_p6 = scmp.lt.s32.totalorder %s1239_s27, 2 }
  0x5f   : > { %s1431_s12 = scalar_select %p30_p4, %s1235_s26, %s32_s8  }
  0x60   : > { %p41_p10 = por %p40_p13, %p39_p8  ;;  %p1582_p3 = scmp.eq.s32.totalorder %s1314_s28, 1 }
  0x61   : > { %s269_s16 = sand.u32 1, %s1235_s26   ;;  %s779_s19 = sshll.u32 %s1239_s27, 7 }
  0x62   : > { %p1435_p5 = por %p1582_p3, %p39_p8  ;;  %s778_s21 = sshll.u32 %s269_s16, 3 }
  0x63   : > { %s1444_s29 = scalar_lea.hbm %s1562_s0, %s779_s19  ;;  %s273_s10 = scalar_lea.vmem [#allocation2], %s778_s21 }
  0x64   : > { %s280_s17 = sshll.u32 %s273_s10, 4  ;;  %p1446_p11 = pnand %p1004_p6, %p41_p10  ;;  %s1450_s17 = int_to_ptr.vmem [resolvable:$true] %s280_s17 }
  0x65   : > { %s270_s14 = scalar_lea.sflag [#allocation3], %s269_s16  ;;  %s1135_s13 = scalar_lea.hbm %s1444_s29, 128 }
  0x66   : > { %p1136_p7 = scmp.ne.s32.totalorder %s1444_s29, %s1135_s13  ;;  %p1137_p9 = pneg %p1446_p11 }
  0x67   : > { %s1140_s8 = scalar_lea.hbm %s1562_s0, 256  ;;  %p1141_p2 = scmp.lt.u32.totalorder %s1444_s29, %s1562_s0 }
  0x68   : > { %p1138_p12 = pnand %p1137_p9, %p1136_p7  ;;  %p1142_p1 = scmp.lt.u32.totalorder %s1140_s8, %s1135_s13 }
  0x69   : > { %p1144_p8 = scmp.lt.u32.totalorder %s1135_s13, %s1444_s29 }
  0x6a   : > { %p1139_p0 = pneg %p1138_p12  ;;  %p1143_p4 = por %p1142_p1, %p1141_p2 }
  0x6c   : > { %p1145_p13 = por %p1144_p8, %p1143_p4 }
  0x6e   : > { %p1146_p6 = pnand %p1145_p13, %p1139_p0 }
  0x70   : > { %1149 = shalt.err (!%p1146_p6)
}
  0x71   : > { %s1150_s16 = scalar_lea.vmem %s1450_s17, 128  ;;  %s1248_s22 = smov [#allocation2]  }
  0x72   : > { %p1151_p10 = scmp.ne.s32.totalorder %s1450_s17, %s1150_s16  ;;  %s1155_s23 = sshll.u32 %s1248_s22, 4  ;;  %s1156_s23 = int_to_ptr.vmem [resolvable:$false] %s1155_s23 }
  0x73   : > { %s1157_s10 = scalar_lea.vmem %s1156_s23, 256  ;;  %p1158_p12 = scmp.lt.s32.totalorder %s1450_s17, %s1156_s23 }
  0x74   : > { %p1153_p3 = pnand %p1151_p10, %p1137_p9  ;;  %p1159_p2 = scmp.lt.s32.totalorder %s1157_s10, %s1150_s16 }
  0x76   : > { %p1154_p7 = pneg %p1153_p3  ;;  %p1160_p1 = por %p1159_p2, %p1158_p12 }
  0x78   : > { %p1161_p4 = pnand %p1160_p1, %p1154_p7 }
  0x7a   : > { %1164 = shalt.err (!%p1161_p4)
}
  0x7b   : > { %996 = dma.hbm_to_vmem [thread:$0]  (!%p1446_p11), %s1444_s29, 128, %s1450_s17, %s270_s14  }
  0x7c   : > { %p1585_p0 = scmp.ne.s32.totalorder %s1578_s9, 0 }
  0x7d   : > { %s1480_s13 = sand.u32 (!%p1585_p0), 1, %s1231_s25   ;;  %p1586_p9 = scmp.ne.s32.totalorder (!%p1585_p0), %s1575_s30, 0 }
  0x7e   : > { %289 = sbr.rel (%p1585_p0) target bundleno = 839 (0x347), region = 48  ;;  %s781_s15 = sshll.u32 (!%p1585_p0), %s1480_s13, 3 }
  0x7f   : > { %s292_s1 = scalar_lea.sflag (!%p1585_p0), [#allocation3], %s1480_s13  ;;  %s1486_s8 = scalar_lea.vmem (!%p1585_p0), [#allocation2], %s781_s15 }
  0x85   : > { %1210 = dma.done.wait (%p1586_p9), %s292_s1, 128  }
  0x86   : > { %1212 = vsyncadd (%p1586_p9), %s292_s1, 4294967168  ;;  %p1587_p11 = scmp.eq.s32.totalorder %s1314_s28, 0 }
  0x88   : > { %1214 = dma.done.wait (%p1587_p11), [#allocation6], 8192   ;;  %p1588_p8 = pmov %p1587_p11 }
  0x8a   : > { %1216 = vsyncadd (%p1588_p8), [#allocation6], 4294959104  ;;  %p1589_p13 = pmov %p1588_p8 }
  0x8b   : > { %p1590_p6 = pmov %p1588_p8 }
  0x8c   : > { %1218 = dma.done.wait (%p1589_p13), [#allocation9], 2048  }
  0x8d   : > { %1220 = vsyncadd (%p1590_p6), [#allocation9], 4294965248  ;;  %v1249_v0 = vmov 0.0   ;;  %v340_v1 = vld [vmem:[#allocation5 + $0x8] sm:$0xff]  ;;  %v342_v2 = vld [vmem:[#allocation5 + $0x18] sm:$0xff]  ;;  %vm1251_vm0 = vmmov 0  }
  0x8e   : > { %447 = vmatprep.mubr.f32.mxu0 %v1249_v0  ;;  %v339_v3 = vld [vmem:[#allocation5] sm:$0xff]  ;;  %v879_v4 = vpack.c.bf16 %v342_v2, %v340_v1  ;;  %v341_v5 = vld [vmem:[#allocation5 + $0x10] sm:$0xff]  ;;  %v344_v6 = vld [vmem:[#allocation5 + $0x28] sm:$0xff]  ;;  %s789_s19 = sshll.u32 %s1314_s28, 7  ;;  %s337_s21 = scalar_lea.vmem [#allocation10], %s781_s15 }
  0x8f   : > { %v346_v7 = vld [vmem:[#allocation5 + $0x38] sm:$0xff]  ;;  %v881_v8 = vpack.c.bf16 %v341_v5, %v339_v3  ;;  %v343_v10 = vld [vmem:[#allocation5 + $0x20] sm:$0xff]  ;;  %v345_v11 = vld [vmem:[#allocation5 + $0x30] sm:$0xff]  ;;  %s673_s16 = sshll.u32 %s337_s21, 4  ;;  %s1518_s10 = scalar_lea.hbm %s1569_s7, %s789_s19  ;;  %s1520_s16 = int_to_ptr.vmem [resolvable:$true] %s673_s16 }
  0x90   : > { %v883_v9 = vpack.c.bf16 %v346_v7, %v344_v6  ;;  %v348_v12 = vld [vmem:[#allocation5 + $0x48] sm:$0xff]  ;;  %880 = vmatprep.subr.bf16.mxu0 %v879_v4  ;;  %v350_v13 = vld [vmem:[#allocation5 + $0x58] sm:$0xff]  ;;  %v885_v14 = vpack.c.bf16 %v345_v11, %v343_v10  ;;  %v347_v16 = vld [vmem:[#allocation5 + $0x40] sm:$0xff]  ;;  %s660_s1 = scalar_lea.sflag [#allocation4], %s1480_s13  ;;  %s1252_s28 = smov [#allocation10]  }
  0x91   : > { %882 = vmatpush1.bf16.msra.mxu0 %v881_v8  ;;  %v887_v15 = vpack.c.bf16 %v350_v13, %v348_v12  ;;  %v349_v17 = vld [vmem:[#allocation5 + $0x50] sm:$0xff]  ;;  %v352_v18 = vld [vmem:[#allocation5 + $0x68] sm:$0xff]  ;;  %v354_v19 = vld [vmem:[#allocation5 + $0x78] sm:$0xff]  ;;  %s1169_s15 = sshll.u32 %s1252_s28, 4  ;;  %s1170_s15 = int_to_ptr.vmem [resolvable:$false] %s1169_s15 }
  0x92   : > { %884 = vmatprep.subr.bf16.mxu0 %v883_v9  ;;  %v889_v20 = vpack.c.bf16 %v349_v17, %v347_v16  ;;  %v891_v21 = vpack.c.bf16 %v354_v19, %v352_v18  ;;  %v351_v22 = vld [vmem:[#allocation5 + $0x60] sm:$0xff]  ;;  %v353_v23 = vld [vmem:[#allocation5 + $0x70] sm:$0xff]  ;;  %v356_v24 = vld [vmem:[#allocation5 + $0x88] sm:$0xff]  ;;  %s1171_s30 = scalar_lea.vmem %s1170_s15, 256  ;;  %p1172_p12 = scmp.lt.s32.totalorder %s1520_s16, %s1170_s15 }
  0x93   : > { %v358_v25 = vld [vmem:[#allocation5 + $0x98] sm:$0xff]  ;;  %v355_v26 = vld [vmem:[#allocation5 + $0x80] sm:$0xff]  ;;  %v357_v27 = vld [vmem:[#allocation5 + $0x90] sm:$0xff]  ;;  %v893_v31 = vpack.c.bf16 %v353_v23, %v351_v22 }
  0x94   : > { %v472_v28 = vld [vmem:[#allocation7 + $0x80] sm:$0xff]  ;;  %v473_v29 = vld [vmem:[#allocation7 + $0x88] sm:$0xff]  ;;  %v474_v34 = vld [vmem:[#allocation7 + $0x90] sm:$0xff]  ;;  %v895_v36 = vpack.c.bf16 %v358_v25, %v356_v24  ;;  %v897_v46 = vpack.c.bf16 %v357_v27, %v355_v26 }
  0x95   : > { %886 = vmatpush1.bf16.msra.mxu0 %v885_v14  ;;  %v456_v30 = vld [vmem:[#allocation7] sm:$0xff]  ;;  %v911_v32 = vpack.c.bf16 %v473_v29, %v472_v28  ;;  %v457_v33 = vld [vmem:[#allocation7 + $0x8] sm:$0xff]  ;;  %v475_v35 = vld [vmem:[#allocation7 + $0x98] sm:$0xff] }
  0x96   : > { %888 = vmatprep.subr.bf16.mxu0 %v887_v15  ;;  %v913_v37 = vpack.c.bf16 %v457_v33, %v456_v30  ;;  %v915_v38 = vpack.c.bf16 %v475_v35, %v474_v34  ;;  %v458_v39 = vld [vmem:[#allocation7 + $0x10] sm:$0xff]  ;;  %v459_v40 = vld [vmem:[#allocation7 + $0x18] sm:$0xff]  ;;  %v476_v41 = vld [vmem:[#allocation7 + $0xa0] sm:$0xff] }
  0x97   : > { %v360_v42 = vld [vmem:[#allocation5 + $0xa8] sm:$0xff]  ;;  %v362_v43 = vld [vmem:[#allocation5 + $0xb8] sm:$0xff]  ;;  %912 = vmatprep.subr.bf16.mxu1 %v911_v32  ;;  %v917_v45 = vpack.c.bf16 %v459_v40, %v458_v39  ;;  %v359_v47 = vld [vmem:[#allocation5 + $0xa0] sm:$0xff] }
  0x98   : > { %v477_v44 = vld [vmem:[#allocation7 + $0xa8] sm:$0xff]  ;;  %914 = vmatpush3.bf16.msra.mxu1 %v913_v37  ;;  %v460_v49 = vld [vmem:[#allocation7 + $0x20] sm:$0xff]  ;;  %v899_v51 = vpack.c.bf16 %v362_v43, %v360_v42  ;;  %v361_v52 = vld [vmem:[#allocation5 + $0xb0] sm:$0xff] }
  0x99   : > { %890 = vmatpush1.bf16.msra.mxu0 %v889_v20  ;;  %916 = vmatprep.subr.bf16.mxu1 %v915_v38  ;;  %v919_v48 = vpack.c.bf16 %v477_v44, %v476_v41  ;;  %v461_v50 = vld [vmem:[#allocation7 + $0x28] sm:$0xff]  ;;  %v478_v53 = vld [vmem:[#allocation7 + $0xb0] sm:$0xff]  ;;  %v479_v54 = vld [vmem:[#allocation7 + $0xb8] sm:$0xff]  ;;  %v901_v58 = vpack.c.bf16 %v361_v52, %v359_v47  ;;  %v1250_v38 = vmov 0.0|0.0  }
  0x9a   : > { %892 = vmatprep.subr.bf16.mxu0 %v891_v21  ;;  %v364_v55 = vld [vmem:[#allocation5 + $0xc8] sm:$0xff]  ;;  %v366_v56 = vld [vmem:[#allocation5 + $0xd8] sm:$0xff]  ;;  %v921_v57 = vpack.c.bf16 %v461_v50, %v460_v49  ;;  %v363_v59 = vld [vmem:[#allocation5 + $0xc0] sm:$0xff]  ;;  %v923_v60 = vpack.c.bf16 %v479_v54, %v478_v53 }
  0x9b   : > { %v462_v61 = vld [vmem:[#allocation7 + $0x30] sm:$0xff]  ;;  %v463_v62 = vld [vmem:[#allocation7 + $0x38] sm:$0xff]  ;;  %v903_v63 = vpack.c.bf16 %v366_v56, %v364_v55  ;;  %v480_v2 = vld [vmem:[#allocation7 + $0xc0] sm:$0xff] }
  0x9c   : > { %918 = vmatpush3.bf16.msra.mxu1 %v917_v45  ;;  %v365_v1 = vld [vmem:[#allocation5 + $0xd0] sm:$0xff]  ;;  %v481_v3 = vld [vmem:[#allocation7 + $0xc8] sm:$0xff]  ;;  %v370_v5 = vld [vmem:[#allocation5 + $0xf8] sm:$0xff]  ;;  %v925_v6 = vpack.c.bf16 %v463_v62, %v462_v61 }
  0x9d   : > { %894 = vmatpush1.bf16.msra.mxu0 %v893_v31  ;;  %920 = vmatprep.subr.bf16.mxu1 %v919_v48  ;;  %v368_v4 = vld [vmem:[#allocation5 + $0xe8] sm:$0xff]  ;;  %v905_v7 = vpack.c.bf16 %v365_v1, %v363_v59  ;;  %v367_v8 = vld [vmem:[#allocation5 + $0xe0] sm:$0xff]  ;;  %v927_v9 = vpack.c.bf16 %v481_v3, %v480_v2  ;;  %v369_v13 = vld [vmem:[#allocation5 + $0xf0] sm:$0xff] }
  0x9e   : > { %896 = vmatprep.subr.bf16.mxu0 %v895_v36  ;;  %v464_v10 = vld [vmem:[#allocation7 + $0x40] sm:$0xff]  ;;  %v465_v11 = vld [vmem:[#allocation7 + $0x48] sm:$0xff]  ;;  %v907_v12 = vpack.c.bf16 %v370_v5, %v368_v4  ;;  %v482_v14 = vld [vmem:[#allocation7 + $0xd0] sm:$0xff]  ;;  %v909_v17 = vpack.c.bf16 %v369_v13, %v367_v8 }
  0x9f   : > { %v483_v15 = vld [vmem:[#allocation7 + $0xd8] sm:$0xff]  ;;  %v929_v16 = vpack.c.bf16 %v465_v11, %v464_v10  ;;  %v466_v19 = vld [vmem:[#allocation7 + $0x50] sm:$0xff]  ;;  %v484_v21 = vld [vmem:[#allocation7 + $0xe0] sm:$0xff] }
  0xa0   : > { %922 = vmatpush3.bf16.msra.mxu1 %v921_v57  ;;  %v931_v18 = vpack.c.bf16 %v483_v15, %v482_v14  ;;  %v467_v20 = vld [vmem:[#allocation7 + $0x58] sm:$0xff]  ;;  %v485_v22 = vld [vmem:[#allocation7 + $0xe8] sm:$0xff]  ;;  %v468_v26 = vld [vmem:[#allocation7 + $0x60] sm:$0xff]  ;;  %v373_v57 = vlaneseq }
  0xa1   : > { %898 = vmatpush1.bf16.msra.mxu0 %v897_v46  ;;  %924 = vmatprep.subr.bf16.mxu1 %v923_v60  ;;  %v933_v23 = vpack.c.bf16 %v467_v20, %v466_v19  ;;  %v338_v24 = vld [vmem:[%s1486_s8] sm:$0xff]  ;;  %v935_v25 = vpack.c.bf16 %v485_v22, %v484_v21  ;;  %v469_v27 = vld [vmem:[#allocation7 + $0x68] sm:$0xff]  ;;  %v565_v35 = vld [vmem:[#allocation8] sm:$0xff]  ;;  %s1165_s8 = scalar_lea.vmem %s1520_s16, 128 }
  0xa2   : > { %900 = vmatprep.subr.bf16.mxu0 %v899_v51  ;;  %v937_v28 = vpack.c.bf16 %v469_v27, %v468_v26  ;;  %v486_v29 = vld [vmem:[#allocation7 + $0xf0] sm:$0xff]  ;;  %v487_v30 = vld [vmem:[#allocation7 + $0xf8] sm:$0xff]  ;;  %v566_v36 = vld [vmem:[#allocation8 + $0x8] sm:$0xff]  ;;  %p1166_p10 = scmp.ne.s32.totalorder %s1520_s16, %s1165_s8  ;;  %p1173_p2 = scmp.lt.s32.totalorder %s1171_s30, %s1165_s8 }
  0xa3   : > { %v939_v31 = vpack.c.bf16 %v487_v30, %v486_v29  ;;  %v470_v32 = vld [vmem:[#allocation7 + $0x70] sm:$0xff]  ;;  %v471_v33 = vld [vmem:[#allocation7 + $0x78] sm:$0xff]  ;;  %v944_v39 = vpack.c.bf16 %v566_v36, %v565_v35  ;;  %v569_v42 = vld [vmem:[#allocation8 + $0x20] sm:$0xff] }
  0xa4   : > { %926 = vmatpush3.bf16.msra.mxu1 %v925_v6  ;;  %v941_v34 = vpack.c.bf16 %v471_v33, %v470_v32  ;;  %v567_v37 = vld [vmem:[#allocation8 + $0x10] sm:$0xff]  ;;  %v568_v40 = vld [vmem:[#allocation8 + $0x18] sm:$0xff]  ;;  %v570_v43 = vld [vmem:[#allocation8 + $0x28] sm:$0xff]  ;;  %p1167_p3 = pnand %p1166_p10, %p1435_p5  ;;  %p1174_p1 = por %p1173_p2, %p1172_p12 }
  0xa5   : > { %902 = vmatpush1.bf16.msra.mxu0 %v901_v58  ;;  %928 = vmatprep.subr.bf16.mxu1 %v927_v9  ;;  %v947_v41 = vpack.c.bf16 %v568_v40, %v567_v37  ;;  %v950_v44 = vpack.c.bf16 %v570_v43, %v569_v42  ;;  %v571_v45 = vld [vmem:[#allocation8 + $0x30] sm:$0xff]  ;;  %v572_v46 = vld [vmem:[#allocation8 + $0x38] sm:$0xff]  ;;  %v573_v48 = vld [vmem:[#allocation8 + $0x40] sm:$0xff]  ;;  %v374_v58 = vshrl.u32 %v373_v57, 7 }
  0xa6   : > { %904 = vmatprep.subr.bf16.mxu0 %v903_v63  ;;  %v953_v47 = vpack.c.bf16 %v572_v46, %v571_v45  ;;  %v574_v49 = vld [vmem:[#allocation8 + $0x48] sm:$0xff]  ;;  %v575_v51 = vld [vmem:[#allocation8 + $0x50] sm:$0xff]  ;;  %v576_v52 = vld [vmem:[#allocation8 + $0x58] sm:$0xff]  ;;  %p1168_p7 = pneg %p1167_p3 }
  0xa7   : > { %v956_v50 = vpack.c.bf16 %v574_v49, %v573_v48  ;;  %v959_v53 = vpack.c.bf16 %v576_v52, %v575_v51  ;;  %v577_v54 = vld [vmem:[#allocation8 + $0x60] sm:$0xff]  ;;  %v578_v55 = vld [vmem:[#allocation8 + $0x68] sm:$0xff]  ;;  %v375_v59 = vsub.s32 0, %v374_v58  ;;  %v371_v60 = vld [vmem:[%s1564_s2] sm:$0x3]  ;;  %v379_v61 = vsub.s32 1, %v374_v58 }
  0xa8   : > { %930 = vmatpush3.bf16.msra.mxu1 %v929_v16  ;;  %v962_v56 = vpack.c.bf16 %v578_v55, %v577_v54  ;;  %v580_v8 = vld [vmem:[#allocation8 + $0x78] sm:$0xff]  ;;  %v786_v11 = vld [vmem:[%s1566_s4] ss:$0 sm:$0xff]  ;;  %p1175_p4 = pnand %p1174_p1, %p1168_p7 }
  0xa9   : > { %906 = vmatpush1.bf16.msra.mxu0 %v905_v7  ;;  %932 = vmatprep.subr.bf16.mxu1 %v931_v18  ;;  %v376_v62 = vrot.slane %v371_v60, %v375_v59  ;;  %v380_v63 = vrot.slane %v371_v60, %v379_v61  ;;  %v579_v7 = vld [vmem:[#allocation8 + $0x70] sm:$0xff] }
  0xaa   : > { %908 = vmatprep.subr.bf16.mxu0 %v907_v12  ;;  %v965_v9 = vpack.c.bf16 %v580_v8, %v579_v7  ;;  %v787_v15 = vld [vmem:[%s1568_s6] ss:$0 sm:$0xff] }
  0xac   : > { %934 = vmatpush3.bf16.msra.mxu1 %v933_v23 }
  0xad   : > { %910 = vmatpush1.bf16.msra.mxu0 %v909_v17  ;;  %936 = vmatprep.subr.bf16.mxu1 %v935_v25 }
  0xae   : > { %943 = vmatprep.subr.bf16.mxu0 %v1250_v38 }
  0xb0   : > { %448 = vmatmul.mubr.f32.vlgmr.msra.gmra.mrb[0].mxu0 %v338_v24  ;;  %938 = vmatpush3.bf16.msra.mxu1 %v937_v28 }
  0xb1   : > { %940 = vmatprep.subr.bf16.mxu1 %v939_v31  ;;  %945 = vmatpush3.bf16.msra.mxu0 %v944_v39 }
  0xb2   : > { %946 = vmatprep.subr.bf16.mxu0 %v1250_v38  ;;  %876 = vmatprep.mubr.msk.f32.mxu0 %vm1251_vm0, %v1249_v0 }
  0xb4   : > { %942 = vmatpush3.bf16.msra.mxu1 %v941_v34 }
  0xb5   : > { %948 = vmatpush3.bf16.msra.mxu0 %v947_v41 }
  0xb6   : > { %949 = vmatprep.subr.bf16.mxu0 %v1250_v38 }
  0xb9   : > { %951 = vmatpush3.bf16.msra.mxu0 %v950_v44 }
  0xba   : > { %952 = vmatprep.subr.bf16.mxu0 %v1250_v38 }
  0xbd   : > { %954 = vmatpush3.bf16.msra.mxu0 %v953_v47 }
  0xbe   : > { %955 = vmatprep.subr.bf16.mxu0 %v1250_v38 }
  0xc1   : > { %957 = vmatpush3.bf16.msra.mxu0 %v956_v50 }
  0xc2   : > { %958 = vmatprep.subr.bf16.mxu0 %v1250_v38 }
  0xc5   : > { %960 = vmatpush3.bf16.msra.mxu0 %v959_v53 }
  0xc6   : > { %961 = vmatprep.subr.bf16.mxu0 %v1250_v38 }
  0xc9   : > { %963 = vmatpush3.bf16.msra.mxu0 %v962_v56 }
  0xca   : > { %964 = vmatprep.subr.bf16.mxu0 %v1250_v38 }
  0xcd   : > { %966 = vmatpush3.bf16.msra.mxu0 %v965_v9 }
 0x183   : > { %v449_v1 = vpop.f32.mrb[0].mxu0 }
 0x184   : > { %v450_v2 = vadd.f32 %v449_v1, %v376_v62  ;;  %v451_v3 = vpop.f32.mrb[1].mxu0 }
 0x185   : > { %v452_v4 = vadd.f32 %v451_v3, %v380_v63 }
 0x186   : > { %v454_v6 = vmax.f32 %v450_v2, 0.0 }
 0x187   : > { %v455_v5 = vmax.f32 %v452_v4, 0.0 }
 0x189   : > { %559 = vmatprep.mubr.f32.mxu1 %v455_v5 }
 0x18a   : > { %560 = vmatmul.mubr.f32.vlgmr.msra.gmra.mrb[0].mxu1 %v454_v6 }
 0x25d   : > { %v824_v10 = vpop.f32.mrb[0].mxu1 }
 0x25e   : > { %v825_v12 = vpop.f32.mrb[1].mxu1 }
 0x25f   : > { %v826_v13 = vadd.f32 %v825_v12, %v824_v10 }
 0x261   : > { %v562_v14 = vadd.f32 %v826_v13, %v786_v11 }
 0x263   : > { %877 = vmatmul.mubr.f32.vlgmr.msra.gmra.mrb[2].mxu0 %v562_v14 }
 0x336   : > { %v654_v0 = vpop.f32.mrb[2].mxu0 }
 0x337   : > { %v655_v16 = vadd.f32 %v787_v15, %v654_v0  ;;  %v878_v17 = vpop.f32.mrb[3].mxu0 }
 0x339   : > { %658 = vst [vmem:[%s337_s21] sm:$0xff] %v655_v16 }
 0x33a   : > { %1178 = shalt.err (!%p1175_p4)
}
 0x33b   : > { %s1179_s13 = scalar_lea.hbm %s1518_s10, 128  ;;  %s1183_s17 = scalar_lea.hbm %s1569_s7, 256 }
 0x33c   : > { %p1180_p0 = scmp.ne.s32.totalorder %s1518_s10, %s1179_s13  ;;  %p1184_p8 = scmp.lt.u32.totalorder %s1518_s10, %s1569_s7 }
 0x33d   : > { %p1185_p13 = scmp.lt.u32.totalorder %s1183_s17, %s1179_s13  ;;  %p1187_p10 = scmp.lt.u32.totalorder %s1179_s13, %s1518_s10 }
 0x33e   : > { %p1181_p9 = pnand %p1180_p0, %p1435_p5 }
 0x33f   : > { %p1186_p6 = por %p1185_p13, %p1184_p8 }
 0x340   : > { %p1182_p11 = pneg %p1181_p9 }
 0x341   : > { %p1188_p3 = por %p1187_p10, %p1186_p6 }
 0x343   : > { %p1189_p7 = pnand %p1188_p3, %p1182_p11 }
 0x345   : > { %1192 = shalt.err (!%p1189_p7)
}
 0x346   : > { %981 = dma.vmem_to_hbm [thread:$0]  (%p1435_p5), %s1520_s16, 128, %s1518_s10, %s660_s1  }
 0x347 PF: > { %s1591_s19 = sld [smem:[#allocation15_spill]]  ;;  %s685_s21 = sand.u32 1, %s1227_s24  }
 0x348   : > { %p1593_p2 = scmp.ge.s32.totalorder %s1239_s27, 2  ;;  %s686_s22 = scalar_lea.sflag [#allocation4], %s685_s21 }
 0x34d   : > { %p1592_p12 = scmp.ne.s32.totalorder %s1591_s19, 0 }
 0x34f   : > { %p998_p1 = pnand %p1593_p2, %p1592_p12 }
 0x351   : > { %1222 = dma.done.wait (!%p998_p1), %s686_s22, 128  }
 0x352   : > { %1224 = vsyncadd (!%p998_p1), %s686_s22, 4294967168  ;;  %p22_p4 = scmp.ge.s32.totalorder %s1403_s18, 4   ;;  %s1594_s24 = smov %s1231_s25 }
 0x353   : > { %s1595_s25 = smov %s1235_s26  ;;  %s1596_s26 = smov %s1431_s12 }
 0x354   : > { %s1597_s27 = smov %s1403_s18  ;;  %24 = sbr.rel (!%p22_p4) target bundleno = 9 (0x9), region = 105 }
 0x35b   :  { %691 = vsyncpa [#allocation3], 1 }
 0x35c   :  { %693 = vsyncpa [#allocation3 + $0x1], 1 }
 0x35d   :  { %694 = vsyncpa [#allocation6], 1 }
 0x35e   :  { %695 = vsyncpa [#allocation9], 1 }
 0x35f   :  { %696 = vsyncpa [#allocation4], 1 }
 0x360   :  { %698 = vsyncpa [#allocation4 + $0x1], 1 }

</bundles_post_ra>
